<compile_context>
chip_gen: v5e
topology: v5e:2x2
jax: 0.10.0
libtpu: 0.0.40
codegen_flags: <defaults>
</compile_context>

<pallas_src>
import functools

import jax
import jax.numpy as jnp
from jax.experimental import pallas as pl
from jax.experimental.pallas import tpu as pltpu

_LANES = 128
_TARGET_BLOCK_BYTES = 1 << 20        # ~1 MiB native-dtype tile per grid step
_CORE_SPLIT = 2                      # leading 'parallel' axis: shards the chunk
                                     # loop across v7x's 2 TensorCores; runs
                                     # sequentially (harmless) on v5e / v6e.
_VMEM_LIMIT = 32 * 1024 * 1024       # safe on v5e/v6e (128 MiB) and v7x (64 MiB)


def _round_up(a, b):
    return ((a + b - 1) // b) * b


def _round_down(a, b):
    return (a // b) * b


# ---------------------------------------------------------------------------
# Pallas kernel: fused fake-quant L2 scoring of all percentile candidates.
# ---------------------------------------------------------------------------
def _pct_score_kernel(params_ref, x_ref, out_ref, *, block_rows, n_valid,
                      chunks_per_core, quant_min, quant_max, num_cand):
    """One grid step: fake-quant MSE partials for all candidates on one tile.

    params_ref : (param_rows, 128) f32; row c = scale_c, row num_cand+c = zp_c,
                 row 2*num_cand+c = 1/scale_c (each broadcast across lanes so
                 the kernel only does vector ops, no scalar extraction).
    x_ref      : (block_rows, 128) tile of the flattened input, native dtype.
    out_ref    : (1, num_cand, 8, 128) f32 per-core SSE accumulator, resident
                 across the inner ("arbitrary") grid axis.
    """
    p = pl.program_id(0)          # core-split index  ("parallel")
    i = pl.program_id(1)          # chunk index       ("arbitrary")

    @pl.when(i == 0)
    def _init():
        out_ref[...] = jnp.zeros_like(out_ref)

    # Validity mask for ragged / duplicated tiles.  Invalid elements are
    # forced to 0, which fake-quantizes with exactly zero error because
    # round(zp) == zp and quant_min <= zp <= quant_max.
    chunk = p * chunks_per_core + i
    row = jax.lax.broadcasted_iota(jnp.int32, (block_rows, _LANES), 0)
    col = jax.lax.broadcasted_iota(jnp.int32, (block_rows, _LANES), 1)
    gidx = (chunk * block_rows + row) * _LANES + col
    x = jnp.where(gidx < n_valid, x_ref[...].astype(jnp.float32), 0.0)

    for c in range(num_cand):                                 # unrolled (4)
        scale = params_ref[pl.ds(c, 1), :]                    # (1, 128)
        zp = params_ref[pl.ds(num_cand + c, 1), :]            # (1, 128)
        inv_scale = params_ref[pl.ds(2 * num_cand + c, 1), :] # (1, 128)
        q = jnp.round(x * inv_scale + zp)
        q = jnp.clip(q, float(quant_min), float(quant_max))
        d = (q - zp) * scale - x                              # fq(x) - x
        d2 = d * d
        if block_rows % 8 == 0:
            # Fold (block_rows,128) -> (8,128) with pure VPU adds; the single
            # expensive cross-lane reduce happens once, in the wrapper.
            out_ref[0, c] += jnp.sum(
                d2.reshape(block_rows // 8, 8, _LANES), axis=0)
        else:
            # Tiny-input fallback (fewer rows than one sublane tile).
            out_ref[0, c, 0, :] += jnp.sum(d2, axis=0)


def _pct_scores_pallas(x, scale, zp, quant_min, quant_max):
    """Mean fake-quant L2 error of x for each (scale, zp) candidate.

    Equivalent to PCTObserver.loss_fx (ch_axis == -1) for all candidates in a
    single pass over x, read in its native dtype and cast per-tile in VMEM.
    """
    num_cand = scale.shape[0]
    n = x.size
    flat = x.reshape(-1)
    if n % _LANES != 0:
        # TODO(synk): ragged lane tail costs one extra copy; conv/fc
        # activations are normally multiples of 128 so this is rarely taken.
        flat = jnp.pad(flat, (0, _LANES - n % _LANES))
    rows = flat.shape[0] // _LANES
    x2d = flat.reshape(rows, _LANES)

    itemsize = x2d.dtype.itemsize
    sublane = max(8, 32 // itemsize)          # 8 (f32) / 16 (bf16) / 32 (int8)
    target_rows = max(sublane,
                      _round_down(_TARGET_BLOCK_BYTES // (_LANES * itemsize),
                                  sublane))
    if rows >= target_rows:
        block_rows = target_rows
    elif rows >= sublane:
        block_rows = _round_down(rows, sublane)
    else:
        block_rows = rows                      # block == full (tiny) dim
    n_chunks = pl.cdiv(rows, block_rows)
    chunks_per_core = pl.cdiv(n_chunks, _CORE_SPLIT)

    # Per-candidate scalars broadcast across lanes: [scale | zp | 1/scale].
    param_rows = _round_up(3 * num_cand, 8)
    pvec = jnp.concatenate([
        scale.astype(jnp.float32),
        zp.astype(jnp.float32),
        (1.0 / scale).astype(jnp.float32),
        jnp.zeros((param_rows - 3 * num_cand,), jnp.float32),
    ])
    params = jnp.broadcast_to(pvec[:, None], (param_rows, _LANES))

    kernel = functools.partial(
        _pct_score_kernel, block_rows=block_rows, n_valid=n,
        chunks_per_core=chunks_per_core, quant_min=quant_min,
        quant_max=quant_max, num_cand=num_cand)

    def x_index_map(p, i):
        # Clamp so a core's tail step never addresses a fully out-of-bounds
        # block; its contribution is masked to zero inside the kernel.
        return (jnp.minimum(p * chunks_per_core + i, n_chunks - 1), 0)

    partials = pl.pallas_call(
        kernel,
        out_shape=jax.ShapeDtypeStruct(
            (_CORE_SPLIT, num_cand, 8, _LANES), jnp.float32),
        grid_spec=pltpu.PrefetchScalarGridSpec(
            num_scalar_prefetch=0,
            grid=(_CORE_SPLIT, chunks_per_core),
            in_specs=[
                pl.BlockSpec((param_rows, _LANES), lambda p, i: (0, 0)),
                pl.BlockSpec((block_rows, _LANES), x_index_map),
            ],
            out_specs=pl.BlockSpec((1, num_cand, 8, _LANES),
                                   lambda p, i: (p, 0, 0, 0)),
        ),
        compiler_params=pltpu.CompilerParams(
            dimension_semantics=("parallel", "arbitrary"),
            vmem_limit_bytes=_VMEM_LIMIT,
        ),
        cost_estimate=pl.CostEstimate(
            flops=10 * num_cand * n,
            transcendentals=0,
            bytes_accessed=n * itemsize + params.size * 4
            + _CORE_SPLIT * num_cand * 8 * _LANES * 4),
    )(params, x2d)

    sse = jnp.sum(partials, axis=(0, 2, 3))            # (num_cand,)
    return sse / jnp.float32(n)


# ---------------------------------------------------------------------------
# Plain-JAX glue (qparams, percentile search, observer state).
# ---------------------------------------------------------------------------
def _calc_qparams(min_val, max_val, quant_min, quant_max, symmetric, eps):
    """JAX port of ObserverBase.calculate_qparams (float zero_point)."""
    min_neg = jnp.minimum(min_val, jnp.zeros_like(min_val))
    max_pos = jnp.maximum(max_val, jnp.zeros_like(max_val))
    if symmetric:
        max_pos = jnp.maximum(-min_neg, max_pos)
        scale = max_pos / (float(quant_max - quant_min) / 2.0)
        scale = jnp.maximum(scale, eps)
        zero_point = jnp.zeros_like(scale)
    else:
        scale = (max_pos - min_neg) / float(quant_max - quant_min)
        scale = jnp.maximum(scale, eps)
        zero_point = quant_min - jnp.round(min_neg / scale)
        zero_point = jnp.clip(zero_point, quant_min, quant_max)
    return scale.astype(jnp.float32), zero_point.astype(jnp.float32)


@functools.partial(
    jax.jit,
    static_argnames=("quant_min", "quant_max", "symmetric", "plist"))
def _pct_search(x, *, quant_min, quant_max, symmetric, plist):
    """PCTObserver.perform_search: percentile candidates + fused scoring."""
    num_cand = len(plist)
    # Cast feeds the sort only; the Pallas kernel reads the native-dtype tensor.
    flat32 = x.reshape(-1).astype(jnp.float32)
    # TODO(synk): torch.quantile (global sort + linear interpolation) has no
    # clean Pallas equivalent; computed with jnp.quantile (one fused sort).
    q_hi = jnp.asarray(plist, dtype=jnp.float32)
    q_lo = jnp.asarray([1.0 - q for q in plist], dtype=jnp.float32)
    q_all = jnp.quantile(flat32, jnp.concatenate([q_hi, q_lo]))
    new_max = q_all[:num_cand]
    new_min = q_all[num_cand:]

    scale, zp = _calc_qparams(new_min, new_max, quant_min, quant_max,
                              symmetric, 1e-8)
    scores = _pct_scores_pallas(x, scale, zp, quant_min, quant_max)

    # Faithful port of the reference selection loop: best_score starts at 1e10
    # and (exactly as in the original code) is never updated, so the LAST
    # candidate whose score is < 1e10 wins.  Done on-device (no host syncs).
    best_score = jnp.float32(1e10)
    best_min = new_min[0]
    best_max = new_max[0]
    for c in range(num_cand):
        take = scores[c] < best_score
        best_min = jnp.where(take, new_min[c], best_min)
        best_max = jnp.where(take, new_max[c], best_max)
    return best_min, best_max


class PCTObserverJAX:
    """JAX/Pallas port of PCTObserver (percentile-search calibration)."""

    def __init__(self, bit=8, symmetric=False, ch_axis=-1):
        self.bit = bit
        self.symmetric = symmetric
        self.ch_axis = ch_axis
        # TODO(synk): per-channel search (ch_axis != -1) not ported.
        assert self.ch_axis == -1
        self.eps = jnp.float32(1e-08)
        self.p = 2.0                    # the kernel specialises the L2 (p=2) loss
        self.plist = (0.99, 0.999, 0.9999, 0.99999)
        self._set_qrange()
        self.min_val = jnp.float32(jnp.inf)
        self.max_val = jnp.float32(-jnp.inf)

    def _set_qrange(self):
        if self.symmetric:
            self.quant_min = -(2 ** (self.bit - 1))
            self.quant_max = 2 ** (self.bit - 1) - 1
        else:
            self.quant_min = 0
            self.quant_max = 2 ** self.bit - 1

    def set_bit(self, bit):
        self.bit = bit
        self._set_qrange()

    def set_name(self, name):
        self.name = name

    def calculate_qparams(self, min_val, max_val):
        scale, zero_point = _calc_qparams(min_val, max_val, self.quant_min,
                                          self.quant_max, self.symmetric,
                                          self.eps)
        if self.symmetric:
            zero_point = zero_point.astype(jnp.int32)
        return scale, zero_point

    def perform_search(self, x):
        return _pct_search(x, quant_min=self.quant_min,
                           quant_max=self.quant_max,
                           symmetric=self.symmetric,
                           plist=tuple(self.plist))

    def forward(self, x_orig):
        if x_orig.size == 0:
            return x_orig
        best_min, best_max = self.perform_search(x_orig)
        # torch.min/max against the running buffers (init +inf / -inf); kept
        # on-device, no host round-trip per calibration step.
        self.min_val = jnp.minimum(self.min_val, best_min)
        self.max_val = jnp.maximum(self.max_val, best_max)

    __call__ = forward


# ---------------------------------------------------------------------------
# Self-test.
# ---------------------------------------------------------------------------
def _scores_ref(x, scale, zp, quant_min, quant_max):
    """Pure-JAX reference for the fused fake-quant L2 scores."""
    xf = x.reshape(-1).astype(jnp.float32)
    inv = 1.0 / scale
    q = jnp.round(xf[None, :] * inv[:, None] + zp[:, None])
    q = jnp.clip(q, float(quant_min), float(quant_max))
    xq = (q - zp[:, None]) * scale[:, None]
    d = xq - xf[None, :]
    return jnp.mean(d * d, axis=1)


if __name__ == "__main__":
    key = jax.random.PRNGKey(0)
    k1, k2 = jax.random.split(key)
    # NCHW conv-style activations (small shapes).
    x1 = jax.random.normal(k1, (2, 4, 16, 16), dtype=jnp.float32) * 3.0 + 0.5
    x2 = jax.random.normal(k2, (2, 4, 16, 16), dtype=jnp.float32) * 1.5 - 0.2

    obs = PCTObserverJAX(bit=8, symmetric=False, ch_axis=-1)
    plist = tuple(obs.plist)
    num_cand = len(plist)

    # 1) Direct check of the Pallas scoring kernel vs a pure-JAX reference.
    flat32 = x1.reshape(-1).astype(jnp.float32)
    q_hi = jnp.asarray(plist, dtype=jnp.float32)
    q_lo = jnp.asarray([1.0 - q for q in plist], dtype=jnp.float32)
    q_all = jnp.quantile(flat32, jnp.concatenate([q_hi, q_lo]))
    new_max1, new_min1 = q_all[:num_cand], q_all[num_cand:]
    scale1, zp1 = _calc_qparams(new_min1, new_max1, obs.quant_min,
                                obs.quant_max, obs.symmetric, 1e-8)
    scores_kernel = _pct_scores_pallas(x1, scale1, zp1, obs.quant_min,
                                       obs.quant_max)
    scores_ref = _scores_ref(x1, scale1, zp1, obs.quant_min, obs.quant_max)
    jax.block_until_ready(scores_kernel)
    assert jnp.allclose(scores_kernel, scores_ref, rtol=1e-5, atol=1e-8), (
        scores_kernel, scores_ref)

    # 2) Full observer forward (selection + running buffers).
    obs.forward(x1)
    jax.block_until_ready(obs.min_val)
    # The reference selection loop never updates best_score, so the last
    # percentile candidate (0.99999) wins whenever its score < 1e10.
    exp_min1, exp_max1 = new_min1[-1], new_max1[-1]
    assert jnp.allclose(obs.min_val, exp_min1, rtol=1e-6, atol=1e-6)
    assert jnp.allclose(obs.max_val, exp_max1, rtol=1e-6, atol=1e-6)

    obs.forward(x2)
    jax.block_until_ready(obs.min_val)
    flat32b = x2.reshape(-1).astype(jnp.float32)
    q_all2 = jnp.quantile(flat32b, jnp.concatenate([q_hi, q_lo]))
    exp_min2 = jnp.minimum(exp_min1, q_all2[num_cand:][-1])
    exp_max2 = jnp.maximum(exp_max1, q_all2[:num_cand][-1])
    assert jnp.allclose(obs.min_val, exp_min2, rtol=1e-6, atol=1e-6)
    assert jnp.allclose(obs.max_val, exp_max2, rtol=1e-6, atol=1e-6)

    # 3) qparams glue (plain JAX) — smoke test.
    scale, zero_point = obs.calculate_qparams(obs.min_val, obs.max_val)
    jax.block_until_ready((scale, zero_point))

    print("KERNEL_OK")
</pallas_src>

<mosaic_0001>
module attributes {stable_mosaic.version = 11 : i64} {
  func.func @_pct_score_kernel(%arg0: i32, %arg1: i32, %arg2: memref<16x128xf32, #tpu.memory_space<vmem>>, %arg3: memref<16x128xf32, #tpu.memory_space<vmem>>, %arg4: memref<1x4x8x128xf32, #tpu.memory_space<vmem>>) attributes {dimension_semantics = [#tpu.dimension_semantics<parallel>, #tpu.dimension_semantics<arbitrary>], iteration_bounds = array<i64: 2, 1>, scalar_prefetch = 0 : i64, scratch_operands = 0 : i64, tpu.core_type = #tpu.core_type<tc>, window_params = [{pipeline_mode = #tpu.pipeline_mode<synchronous>, transform_indices = @transform_0, window_bounds = array<i64: 16, 128>}, {transform_indices = @transform_1, window_bounds = array<i64: 16, 128>}, {transform_indices = @transform_2, window_bounds = array<i64: 1, 4, 8, 128>}]} {
    %c0_i32 = arith.constant 0 : i32
    %0 = arith.cmpi eq, %arg1, %c0_i32 : i32
    %1 = arith.extui %0 : i1 to i32
    %c0_i32_0 = arith.constant 0 : i32
    %2 = arith.cmpi ne, %1, %c0_i32_0 : i32
    scf.if %2 {
      %cst_59 = arith.constant 0.000000e+00 : f32
      %122 = vector.broadcast %cst_59 : f32 to vector<1x4x8x128xf32>
      %c0_60 = arith.constant 0 : index
      %c0_61 = arith.constant 0 : index
      %c0_62 = arith.constant 0 : index
      %c0_63 = arith.constant 0 : index
      %123 = vector.load %arg4[%c0_60, %c0_61, %c0_62, %c0_63] : memref<1x4x8x128xf32, #tpu.memory_space<vmem>>, vector<1x4x8x128xf32>
      tpu.vector_store %arg4[%c0_60, %c0_61, %c0_62, %c0_63], %122 {strides = array<i32>} : memref<1x4x8x128xf32, #tpu.memory_space<vmem>>, vector<1x4x8x128xf32>,
    } else {
    }
    %c1_i32 = arith.constant 1 : i32
    %3 = arith.muli %arg0, %c1_i32 : i32
    %4 = arith.addi %3, %arg1 : i32
    %5 = tpu.iota {dimensions = array<i32: 0>} : vector<16x128xi32>
    %6 = tpu.iota {dimensions = array<i32: 1>} : vector<16x128xi32>
    %c16_i32 = arith.constant 16 : i32
    %7 = arith.muli %4, %c16_i32 : i32
    %8 = vector.broadcast %7 : i32 to vector<16x128xi32>
    %9 = arith.addi %8, %5 : vector<16x128xi32>
    %c128_i32 = arith.constant 128 : i32
    %10 = vector.broadcast %c128_i32 : i32 to vector<16x128xi32>
    %11 = arith.muli %9, %10 : vector<16x128xi32>
    %12 = arith.addi %11, %6 : vector<16x128xi32>
    %c2048_i32 = arith.constant 2048 : i32
    %13 = vector.broadcast %c2048_i32 : i32 to vector<16x128xi32>
    %14 = arith.cmpi slt, %12, %13 : vector<16x128xi32>
    %c0 = arith.constant 0 : index
    %c0_1 = arith.constant 0 : index
    %15 = vector.load %arg3[%c0, %c0_1] : memref<16x128xf32, #tpu.memory_space<vmem>>, vector<16x128xf32>
    %cst = arith.constant 0.000000e+00 : f32
    %16 = vector.broadcast %cst : f32 to vector<16x128xf32>
    %17 = arith.select %14, %15, %16 : vector<16x128xi1>, vector<16x128xf32>
    %c0_2 = arith.constant 0 : index
    %c0_3 = arith.constant 0 : index
    %18 = vector.load %arg2[%c0_2, %c0_3] : memref<16x128xf32, #tpu.memory_space<vmem>>, vector<1x128xf32>
    %c4 = arith.constant 4 : index
    %c0_4 = arith.constant 0 : index
    %19 = vector.load %arg2[%c4, %c0_4] : memref<16x128xf32, #tpu.memory_space<vmem>>, vector<1x128xf32>
    %c8 = arith.constant 8 : index
    %c0_5 = arith.constant 0 : index
    %20 = vector.load %arg2[%c8, %c0_5] : memref<16x128xf32, #tpu.memory_space<vmem>>, vector<1x128xf32>
    %21 = vector.broadcast %20 : vector<1x128xf32> to vector<16x128xf32>
    %22 = arith.mulf %17, %21 : vector<16x128xf32>
    %23 = vector.broadcast %19 : vector<1x128xf32> to vector<16x128xf32>
    %24 = arith.addf %22, %23 : vector<16x128xf32>
    %25 = math.roundeven %24 : vector<16x128xf32>
    %cst_6 = arith.constant 0.000000e+00 : f32
    %cst_7 = arith.constant 2.550000e+02 : f32
    %26 = vector.broadcast %cst_6 : f32 to vector<16x128xf32>
    %27 = arith.maximumf %26, %25 : vector<16x128xf32>
    %28 = vector.broadcast %cst_7 : f32 to vector<16x128xf32>
    %29 = arith.minimumf %28, %27 : vector<16x128xf32>
    %30 = vector.broadcast %19 : vector<1x128xf32> to vector<16x128xf32>
    %31 = arith.subf %29, %30 : vector<16x128xf32>
    %32 = vector.broadcast %18 : vector<1x128xf32> to vector<16x128xf32>
    %33 = arith.mulf %31, %32 : vector<16x128xf32>
    %34 = arith.subf %33, %17 : vector<16x128xf32>
    %35 = arith.mulf %34, %34 : vector<16x128xf32>
    %c0_8 = arith.constant 0 : index
    %c0_9 = arith.constant 0 : index
    %c0_10 = arith.constant 0 : index
    %c0_11 = arith.constant 0 : index
    %36 = vector.load %arg4[%c0_8, %c0_9, %c0_10, %c0_11] : memref<1x4x8x128xf32, #tpu.memory_space<vmem>>, vector<1x1x8x128xf32>
    %37 = vector.shape_cast %36 : vector<1x1x8x128xf32> to vector<8x128xf32>
    %38 = vector.shape_cast %35 : vector<16x128xf32> to vector<2x8x128xf32>
    %cst_12 = arith.constant dense<0.000000e+00> : vector<8x128xf32>
    %39 = vector.multi_reduction <add>, %38, %cst_12 [0] : vector<2x8x128xf32> to vector<8x128xf32>
    %40 = arith.addf %37, %39 : vector<8x128xf32>
    %c0_13 = arith.constant 0 : index
    %c0_14 = arith.constant 0 : index
    %c0_15 = arith.constant 0 : index
    %c0_16 = arith.constant 0 : index
    %41 = vector.load %arg4[%c0_13, %c0_14, %c0_15, %c0_16] : memref<1x4x8x128xf32, #tpu.memory_space<vmem>>, vector<1x1x8x128xf32>
    %42 = vector.shape_cast %41 : vector<1x1x8x128xf32> to vector<8x128xf32>
    %43 = vector.shape_cast %40 : vector<8x128xf32> to vector<1x1x8x128xf32>
    tpu.vector_store %arg4[%c0_13, %c0_14, %c0_15, %c0_16], %43 {strides = array<i32>} : memref<1x4x8x128xf32, #tpu.memory_space<vmem>>, vector<1x1x8x128xf32>,
    %c1 = arith.constant 1 : index
    %c0_17 = arith.constant 0 : index
    %44 = vector.load %arg2[%c1, %c0_17] : memref<16x128xf32, #tpu.memory_space<vmem>>, vector<1x128xf32>
    %c5 = arith.constant 5 : index
    %c0_18 = arith.constant 0 : index
    %45 = vector.load %arg2[%c5, %c0_18] : memref<16x128xf32, #tpu.memory_space<vmem>>, vector<1x128xf32>
    %c9 = arith.constant 9 : index
    %c0_19 = arith.constant 0 : index
    %46 = vector.load %arg2[%c9, %c0_19] : memref<16x128xf32, #tpu.memory_space<vmem>>, vector<1x128xf32>
    %47 = vector.broadcast %46 : vector<1x128xf32> to vector<16x128xf32>
    %48 = arith.mulf %17, %47 : vector<16x128xf32>
    %49 = vector.broadcast %45 : vector<1x128xf32> to vector<16x128xf32>
    %50 = arith.addf %48, %49 : vector<16x128xf32>
    %51 = math.roundeven %50 : vector<16x128xf32>
    %cst_20 = arith.constant 0.000000e+00 : f32
    %cst_21 = arith.constant 2.550000e+02 : f32
    %52 = vector.broadcast %cst_20 : f32 to vector<16x128xf32>
    %53 = arith.maximumf %52, %51 : vector<16x128xf32>
    %54 = vector.broadcast %cst_21 : f32 to vector<16x128xf32>
    %55 = arith.minimumf %54, %53 : vector<16x128xf32>
    %56 = vector.broadcast %45 : vector<1x128xf32> to vector<16x128xf32>
    %57 = arith.subf %55, %56 : vector<16x128xf32>
    %58 = vector.broadcast %44 : vector<1x128xf32> to vector<16x128xf32>
    %59 = arith.mulf %57, %58 : vector<16x128xf32>
    %60 = arith.subf %59, %17 : vector<16x128xf32>
    %61 = arith.mulf %60, %60 : vector<16x128xf32>
    %c0_22 = arith.constant 0 : index
    %c1_23 = arith.constant 1 : index
    %c0_24 = arith.constant 0 : index
    %c0_25 = arith.constant 0 : index
    %62 = vector.load %arg4[%c0_22, %c1_23, %c0_24, %c0_25] : memref<1x4x8x128xf32, #tpu.memory_space<vmem>>, vector<1x1x8x128xf32>
    %63 = vector.shape_cast %62 : vector<1x1x8x128xf32> to vector<8x128xf32>
    %64 = vector.shape_cast %61 : vector<16x128xf32> to vector<2x8x128xf32>
    %cst_26 = arith.constant dense<0.000000e+00> : vector<8x128xf32>
    %65 = vector.multi_reduction <add>, %64, %cst_26 [0] : vector<2x8x128xf32> to vector<8x128xf32>
    %66 = arith.addf %63, %65 : vector<8x128xf32>
    %c0_27 = arith.constant 0 : index
    %c1_28 = arith.constant 1 : index
    %c0_29 = arith.constant 0 : index
    %c0_30 = arith.constant 0 : index
    %67 = vector.load %arg4[%c0_27, %c1_28, %c0_29, %c0_30] : memref<1x4x8x128xf32, #tpu.memory_space<vmem>>, vector<1x1x8x128xf32>
    %68 = vector.shape_cast %67 : vector<1x1x8x128xf32> to vector<8x128xf32>
    %69 = vector.shape_cast %66 : vector<8x128xf32> to vector<1x1x8x128xf32>
    tpu.vector_store %arg4[%c0_27, %c1_28, %c0_29, %c0_30], %69 {strides = array<i32>} : memref<1x4x8x128xf32, #tpu.memory_space<vmem>>, vector<1x1x8x128xf32>,
    %c2 = arith.constant 2 : index
    %c0_31 = arith.constant 0 : index
    %70 = vector.load %arg2[%c2, %c0_31] : memref<16x128xf32, #tpu.memory_space<vmem>>, vector<1x128xf32>
    %c6 = arith.constant 6 : index
    %c0_32 = arith.constant 0 : index
    %71 = vector.load %arg2[%c6, %c0_32] : memref<16x128xf32, #tpu.memory_space<vmem>>, vector<1x128xf32>
    %c10 = arith.constant 10 : index
    %c0_33 = arith.constant 0 : index
    %72 = vector.load %arg2[%c10, %c0_33] : memref<16x128xf32, #tpu.memory_space<vmem>>, vector<1x128xf32>
    %73 = vector.broadcast %72 : vector<1x128xf32> to vector<16x128xf32>
    %74 = arith.mulf %17, %73 : vector<16x128xf32>
    %75 = vector.broadcast %71 : vector<1x128xf32> to vector<16x128xf32>
    %76 = arith.addf %74, %75 : vector<16x128xf32>
    %77 = math.roundeven %76 : vector<16x128xf32>
    %cst_34 = arith.constant 0.000000e+00 : f32
    %cst_35 = arith.constant 2.550000e+02 : f32
    %78 = vector.broadcast %cst_34 : f32 to vector<16x128xf32>
    %79 = arith.maximumf %78, %77 : vector<16x128xf32>
    %80 = vector.broadcast %cst_35 : f32 to vector<16x128xf32>
    %81 = arith.minimumf %80, %79 : vector<16x128xf32>
    %82 = vector.broadcast %71 : vector<1x128xf32> to vector<16x128xf32>
    %83 = arith.subf %81, %82 : vector<16x128xf32>
    %84 = vector.broadcast %70 : vector<1x128xf32> to vector<16x128xf32>
    %85 = arith.mulf %83, %84 : vector<16x128xf32>
    %86 = arith.subf %85, %17 : vector<16x128xf32>
    %87 = arith.mulf %86, %86 : vector<16x128xf32>
    %c0_36 = arith.constant 0 : index
    %c2_37 = arith.constant 2 : index
    %c0_38 = arith.constant 0 : index
    %c0_39 = arith.constant 0 : index
    %88 = vector.load %arg4[%c0_36, %c2_37, %c0_38, %c0_39] : memref<1x4x8x128xf32, #tpu.memory_space<vmem>>, vector<1x1x8x128xf32>
    %89 = vector.shape_cast %88 : vector<1x1x8x128xf32> to vector<8x128xf32>
    %90 = vector.shape_cast %87 : vector<16x128xf32> to vector<2x8x128xf32>
    %cst_40 = arith.constant dense<0.000000e+00> : vector<8x128xf32>
    %91 = vector.multi_reduction <add>, %90, %cst_40 [0] : vector<2x8x128xf32> to vector<8x128xf32>
    %92 = arith.addf %89, %91 : vector<8x128xf32>
    %c0_41 = arith.constant 0 : index
    %c2_42 = arith.constant 2 : index
    %c0_43 = arith.constant 0 : index
    %c0_44 = arith.constant 0 : index
    %93 = vector.load %arg4[%c0_41, %c2_42, %c0_43, %c0_44] : memref<1x4x8x128xf32, #tpu.memory_space<vmem>>, vector<1x1x8x128xf32>
    %94 = vector.shape_cast %93 : vector<1x1x8x128xf32> to vector<8x128xf32>
    %95 = vector.shape_cast %92 : vector<8x128xf32> to vector<1x1x8x128xf32>
    tpu.vector_store %arg4[%c0_41, %c2_42, %c0_43, %c0_44], %95 {strides = array<i32>} : memref<1x4x8x128xf32, #tpu.memory_space<vmem>>, vector<1x1x8x128xf32>,
    %c3 = arith.constant 3 : index
    %c0_45 = arith.constant 0 : index
    %96 = vector.load %arg2[%c3, %c0_45] : memref<16x128xf32, #tpu.memory_space<vmem>>, vector<1x128xf32>
    %c7 = arith.constant 7 : index
    %c0_46 = arith.constant 0 : index
    %97 = vector.load %arg2[%c7, %c0_46] : memref<16x128xf32, #tpu.memory_space<vmem>>, vector<1x128xf32>
    %c11 = arith.constant 11 : index
    %c0_47 = arith.constant 0 : index
    %98 = vector.load %arg2[%c11, %c0_47] : memref<16x128xf32, #tpu.memory_space<vmem>>, vector<1x128xf32>
    %99 = vector.broadcast %98 : vector<1x128xf32> to vector<16x128xf32>
    %100 = arith.mulf %17, %99 : vector<16x128xf32>
    %101 = vector.broadcast %97 : vector<1x128xf32> to vector<16x128xf32>
    %102 = arith.addf %100, %101 : vector<16x128xf32>
    %103 = math.roundeven %102 : vector<16x128xf32>
    %cst_48 = arith.constant 0.000000e+00 : f32
    %cst_49 = arith.constant 2.550000e+02 : f32
    %104 = vector.broadcast %cst_48 : f32 to vector<16x128xf32>
    %105 = arith.maximumf %104, %103 : vector<16x128xf32>
    %106 = vector.broadcast %cst_49 : f32 to vector<16x128xf32>
    %107 = arith.minimumf %106, %105 : vector<16x128xf32>
    %108 = vector.broadcast %97 : vector<1x128xf32> to vector<16x128xf32>
    %109 = arith.subf %107, %108 : vector<16x128xf32>
    %110 = vector.broadcast %96 : vector<1x128xf32> to vector<16x128xf32>
    %111 = arith.mulf %109, %110 : vector<16x128xf32>
    %112 = arith.subf %111, %17 : vector<16x128xf32>
    %113 = arith.mulf %112, %112 : vector<16x128xf32>
    %c0_50 = arith.constant 0 : index
    %c3_51 = arith.constant 3 : index
    %c0_52 = arith.constant 0 : index
    %c0_53 = arith.constant 0 : index
    %114 = vector.load %arg4[%c0_50, %c3_51, %c0_52, %c0_53] : memref<1x4x8x128xf32, #tpu.memory_space<vmem>>, vector<1x1x8x128xf32>
    %115 = vector.shape_cast %114 : vector<1x1x8x128xf32> to vector<8x128xf32>
    %116 = vector.shape_cast %113 : vector<16x128xf32> to vector<2x8x128xf32>
    %cst_54 = arith.constant dense<0.000000e+00> : vector<8x128xf32>
    %117 = vector.multi_reduction <add>, %116, %cst_54 [0] : vector<2x8x128xf32> to vector<8x128xf32>
    %118 = arith.addf %115, %117 : vector<8x128xf32>
    %c0_55 = arith.constant 0 : index
    %c3_56 = arith.constant 3 : index
    %c0_57 = arith.constant 0 : index
    %c0_58 = arith.constant 0 : index
    %119 = vector.load %arg4[%c0_55, %c3_56, %c0_57, %c0_58] : memref<1x4x8x128xf32, #tpu.memory_space<vmem>>, vector<1x1x8x128xf32>
    %120 = vector.shape_cast %119 : vector<1x1x8x128xf32> to vector<8x128xf32>
    %121 = vector.shape_cast %118 : vector<8x128xf32> to vector<1x1x8x128xf32>
    tpu.vector_store %arg4[%c0_55, %c3_56, %c0_57, %c0_58], %121 {strides = array<i32>} : memref<1x4x8x128xf32, #tpu.memory_space<vmem>>, vector<1x1x8x128xf32>,
    return
  }
  func.func @transform_0(%arg0: i32, %arg1: i32) -> (i32, i32) {
    %c0_i32 = arith.constant 0 : i32
    %c0_i32_0 = arith.constant 0 : i32
    %c0_i32_1 = arith.constant 0 : i32
    return %c0_i32, %c0_i32_0 : i32, i32
  }
  func.func @transform_1(%arg0: i32, %arg1: i32) -> (i32, i32) {
    %c1_i32 = arith.constant 1 : i32
    %0 = arith.muli %arg0, %c1_i32 : i32
    %1 = arith.addi %0, %arg1 : i32
    %c0_i32 = arith.constant 0 : i32
    %2 = arith.minsi %1, %c0_i32 : i32
    %c0_i32_0 = arith.constant 0 : i32
    %c0_i32_1 = arith.constant 0 : i32
    return %2, %c0_i32_0 : i32, i32
  }
  func.func @transform_2(%arg0: i32, %arg1: i32) -> (i32, i32, i32, i32) {
    %c0_i32 = arith.constant 0 : i32
    %c0_i32_0 = arith.constant 0 : i32
    %c0_i32_1 = arith.constant 0 : i32
    %c0_i32_2 = arith.constant 0 : i32
    return %arg0, %c0_i32, %c0_i32_0, %c0_i32_1 : i32, i32, i32, i32
  }
}

</mosaic_0001>

<bundles_post_ra>
// kernel: tpu_custom_call.1
= control target key start
LH: loop header
LB: loop body
LE: loop exit
PB: predicated region body
PF: predicated region fallthrough
CT: control target
= control target key end

     0   :  { %7 = vsyncpa [#allocation3], 0  ;;  %s1099_s0 = inlined_call_operand.hbm [shape: f32[16,128], index: 0, kind: input, shape index: {}]   ;;  %s1100_s1 = inlined_call_operand.hbm [shape: f32[16,128], index: 1, kind: input, shape index: {}]   ;;  %s1101_s2 = inlined_call_operand.hbm [shape: f32[2,4,8,128], index: 2, kind: output, shape index: {}]  }
   0x1   :  { %8 = vsyncpa [#allocation6], 0 }
   0x2   :  { %10 = vsyncpa [#allocation6 + $0x1], 0 }
   0x3   :  { %11 = vsyncpa [#allocation4], 0 }
   0x4   :  { %13 = vsyncpa [#allocation4 + $0x1], 0  ;;  %s852_s9 = smov 0   ;;  %s854_s10 = smov 0  }
   0x5   :  { %s856_s11 = smov 0   ;;  %s858_s12 = smov 0  }
   0x6   :  { %s860_s13 = smov 0   ;;  %s862_s14 = smov 0  }
   0x7   :  { %s864_s15 = smov 0   ;;  %s866_s16 = smov 0  }
   0x8 LB: > { %s458_s17 = sadd.s32 4294967295, %s829_s16   ;;  %s459_s18 = sadd.s32 4294967294, %s829_s16   ;;  %s829_s16 = sphi %s866_s16, %s19_s16   ;;  %s825_s15 = sphi %s864_s15, %s1125_s15   ;;  %s821_s14 = sphi %s862_s14, %s1124_s14   ;;  %s817_s13 = sphi %s860_s13, %s1089_s13   ;;  %s813_s12 = sphi %s858_s12, %s1123_s12   ;;  %s809_s11 = sphi %s856_s11, %s1122_s11   ;;  %s805_s10 = sphi %s854_s10, %s1121_s10   ;;  %s801_s9 = sphi %s852_s9, %s1120_s9  }
   0x9   : > { %p78_p0 = scmp.ne.s32.totalorder %s817_s13, %s813_s12  ;;  %p893_p1 = scmp.eq.s32.totalorder %s458_s17, 0 }
   0xa   : > { %p101_p2 = scmp.ne.s32.totalorder %s809_s11, %s805_s10  ;;  %p102_p3 = scmp.eq.s32.totalorder %s458_s17, 1 }
   0xb   : > { %p901_p4 = por %p893_p1, %p78_p0  ;;  %p107_p5 = scmp.ne.s32.totalorder %s805_s10, %s801_s9 }
   0xc   : > { %p907_p6 = por %p102_p3, %p101_p2  ;;  %p108_p7 = scmp.eq.s32.totalorder %s459_s18, 1 }
   0xd   : > { %p460_p8 = scmp.ge.s32.totalorder %s829_s16, 1  ;;  %p115_p9 = scmp.lt.s32.totalorder %s829_s16, 3 }
   0xe   : > { %p913_p10 = por %p108_p7, %p107_p5  ;;  %s126_s26 = sshll.u32 %s1099_s0, 4  ;;  %s127_s26 = int_to_ptr.hbm [resolvable:$true] %s126_s26 }
   0xf   : > { %p917_p11 = pnand %p460_p8, %p115_p9  ;;  %s831_s27 = smov [#allocation2]  }
  0x10   : > { %s128_s28 = sshll.u32 %s831_s27, 4  ;;  %s832_s29 = smov 128   ;;  %s129_s28 = int_to_ptr.vmem [resolvable:$true] %s128_s28 }
  0x11   : > { %p556_p12 = pneg %p917_p11  ;;  %s833_s30 = smov 8  }
  0x12   : > { %s31_s3 = sadd.s32 1, %s825_s15  ;;  %p798_p3 = scmp.ne.s32.totalorder %s817_s13, 0 }
  0x13   : > { %p557_p13 = pnand %p556_p12, %p893_p1  ;;  %p33_p2 = scmp.ge.s32.totalorder %s31_s3, 2 }
  0x14   : > { %p73_p5 = scmp.eq.s32.totalorder %s829_s16, 0  ;;  %s91_s5 = sadd.s32 1, %s809_s11 }
  0x15   : > { %559 = dma.hbm_to_vmem [thread:$0]  (!%p557_p13), %s127_s26, 256, %s129_s28, [#allocation3], %s832_s29, %s832_s29, %s833_s30  }
  0x16   : > { %s1127_s3 = smov (%p33_p2, %s31_s3), 0  ;;  %p74_p8 = por %p798_p3, %p73_p5 }
  0x17   : > { %s88_s4 = ssub.s32 %s825_s15, %s1127_s3  ;;  %p569_p9 = scmp.lt.s32.totalorder %s829_s16, 2 }
  0x18   : > { %p89_p7 = scmp.eq.s32.totalorder %s88_s4, 0  ;;  %s155_s12 = sshll.u32 %s1100_s1, 4  ;;  %s156_s12 = int_to_ptr.hbm [resolvable:$true] %s155_s12 }
  0x19   : > { %s834_s17 = smov [#allocation5]   ;;  %p561_p12 = pnand %p569_p9, %p74_p8 }
  0x1a   : > { %s942_s6 = scalar_select %p89_p7, %s809_s11, %s91_s5  }
  0x1b   : > { %s157_s18 = sshll.u32 %s834_s17, 4  ;;  %s692_s24 = sshra.s32 %s156_s12, 4  ;;  %s158_s18 = int_to_ptr.vmem [resolvable:$true] %s157_s18  ;;  %s693_s24 = int_to_ptr.hbm [resolvable:$true] %s692_s24 }
  0x1c   : > { %s694_s25 = scalar_lea.hbm %s693_s24, 16  ;;  %p696_p2 = pneg %p561_p12 }
  0x1d   : > { %p695_p13 = scmp.ne.s32.totalorder %s693_s24, %s694_s25  ;;  %s699_s28 = scalar_lea.hbm %s1100_s1, 16 }
  0x1e   : > { %p701_p5 = scmp.lt.s32.totalorder %s699_s28, %s694_s25 }
  0x1f   : > { %p697_p0 = pnand %p696_p2, %p695_p13 }
  0x21   : > { %p698_p3 = pneg %p697_p0 }
  0x23   : > { %p703_p7 = pnand %p701_p5, %p698_p3 }
  0x25   : > { %706 = shalt.err (!%p703_p7)
}
  0x26   : > { %563 = dma.hbm_to_vmem [thread:$0]  (!%p561_p12), %s156_s12, 256, %s158_s18, [#allocation6], %s832_s29, %s832_s29, %s833_s30  }
  0x27   : > { %169 = sbr.rel (%p917_p11) target bundleno = 113 (0x71), region = 28 }
  0x2c   : > { %787 = dma.done.wait (%p893_p1), [#allocation3], 256  }
  0x2d   : > { %789 = vsyncadd (%p893_p1), [#allocation3], 4294967040  ;;  %s176_s4 = sand.u32 1, %s817_s13  }
  0x2e   : > { %s468_s5 = sshll.u32 %s176_s4, 4  ;;  %s177_s7 = scalar_lea.sflag [#allocation6], %s176_s4 }
  0x2f   : > { %s180_s8 = scalar_lea.vmem [#allocation5], %s468_s5 }
  0x30   : > { %791 = dma.done.wait (%p901_p4), %s177_s7, 256  }
  0x31   : > { %793 = vsyncadd (%p901_p4), %s177_s7, 4294967040  ;;  %v215_v0 = vlaneseq  ;;  %s470_s23 = sshll.u32 %s821_s14, 4  ;;  %v230_v10 = vld [vmem:[%s180_s8] sm:$0xff]  ;;  %v650_v11 = vld [vmem:[#allocation2 + $0x8] ss:$0 sm:$0xff]  ;;  %s199_s19 = sand.u32 1, %s805_s10  }
  0x32   : > { %v221_v1 = vstv %s470_s23  ;;  %v965_v12 = vld [vmem:[#allocation2 + $0x4] ss:$0 sm:$0xff]  ;;  %v231_v14 = vld [vmem:[%s180_s8 + $0x8] sm:$0xff]  ;;  %v970_v18 = vld [vmem:[#allocation2 + $0x5] ss:$0 sm:$0xff]  ;;  %s469_s20 = sshll.u32 %s199_s19, 5 }
  0x33   : > { %v216_v2 = vshrl.u32 %v215_v0, 7  ;;  %v219_v4 = vand.u32 127, %v215_v0  ;;  %v653_v16 = vld [vmem:[#allocation2 + $0x9] ss:$0 sm:$0xff]  ;;  %v656_v32 = vld [vmem:[#allocation2 + $0xa] ss:$0 sm:$0xff] }
  0x34   : > { %v981_v37 = vld [vmem:[#allocation2 + $0x6] ss:$0 sm:$0xff]  ;;  %v659_v42 = vld [vmem:[#allocation2 + $0xb] ss:$0 sm:$0xff]  ;;  %s1043_s29 = scalar_lea.vmem [#allocation7], %s469_s20  ;;  %s483_s30 = sshll.u32 %s821_s14, 5 }
  0x35   : > { %v217_v3 = vadd.s32 8, %v216_v2  ;;  %v222_v5 = vadd.s32 %v221_v1, %v216_v2  ;;  %s361_s18 = scalar_lea.hbm %s1101_s2, %s483_s30  ;;  %s362_s24 = sshll.u32 %s1043_s29, 4  ;;  %s363_s24 = int_to_ptr.vmem [resolvable:$true] %s362_s24 }
  0x36   : > { %s364_s25 = sshll.u32 %s361_s18, 4  ;;  %s350_s14 = scalar_lea.sflag [#allocation4], %s199_s19  ;;  %s365_s25 = int_to_ptr.hbm [resolvable:$true] %s364_s25 }
  0x37   : > { %v223_v6 = vadd.s32 %v221_v1, %v217_v3  ;;  %v224_v7 = vmul.u32 128, %v222_v5  ;;  %s736_s26 = sshra.s32 %s365_s25, 4  ;;  %s742_s5 = scalar_lea.hbm %s1101_s2, 64  ;;  %s737_s26 = int_to_ptr.hbm [resolvable:$true] %s736_s26 }
  0x38   : > { %s738_s27 = scalar_lea.hbm %s737_s26, 32  ;;  %p743_p0 = scmp.lt.s32.totalorder %s737_s26, %s1101_s2 }
  0x39   : > { %v225_v8 = vmul.u32 128, %v223_v6  ;;  %v226_v9 = vadd.s32 %v224_v7, %v219_v4  ;;  %p739_p1 = scmp.ne.s32.totalorder %s737_s26, %s738_s27  ;;  %p744_p8 = scmp.lt.s32.totalorder %s742_s5, %s738_s27 }
  0x3b   : > { %v227_v13 = vadd.s32 %v225_v8, %v219_v4  ;;  %vm228_vm0 = vcmp.lt.s32.totalorder %v226_v9, 2048  ;;  %v652_v4 = vld [vmem:[#allocation2] ss:$0 sm:$0xff]  ;;  %p740_p4 = pnand %p739_p1, %p907_p6  ;;  %p745_p9 = por %p744_p8, %p743_p0 }
  0x3c   : > { %v967_v15 = vsel %vm228_vm0, %v230_v10, 0.0  ;;  %v655_v10 = vld [vmem:[#allocation2 + $0x1] ss:$0 sm:$0xff] }
  0x3d   : > { %vm229_vm1 = vcmp.lt.s32.totalorder %v227_v13, 2048  ;;  %v238_v17 = vmul.f32 %v650_v11, %v967_v15  ;;  %v266_v20 = vmul.f32 %v653_v16, %v967_v15  ;;  %v295_v50 = vmul.f32 %v656_v32, %v967_v15  ;;  %p741_p11 = pneg %p740_p4 }
  0x3e   : > { %v972_v19 = vsel %vm229_vm1, %v231_v14, 0.0  ;;  %v324_v58 = vmul.f32 %v659_v42, %v967_v15 }
  0x3f   : > { %v239_v21 = vmul.f32 %v650_v11, %v972_v19  ;;  %v241_v22 = vadd.f32 %v965_v12, %v238_v17  ;;  %v267_v23 = vmul.f32 %v653_v16, %v972_v19  ;;  %v269_v24 = vadd.f32 %v970_v18, %v266_v20  ;;  %p746_p12 = pnand %p745_p9, %p741_p11 }
  0x40   : > { %v296_v54 = vmul.f32 %v656_v32, %v972_v19  ;;  %v298_v57 = vadd.f32 %v981_v37, %v295_v50  ;;  %v325_v2 = vmul.f32 %v659_v42, %v972_v19 }
  0x41   : > { %v242_v25 = vadd.f32 %v965_v12, %v239_v21  ;;  %v484_v26 = vand.u32 2147483647, %v241_v22  ;;  %v486_v27 = vcvt.f32.s32 %v241_v22  ;;  %v489_v28 = vand.u32 2147483648, %v241_v22  ;;  %v1013_v21 = vld [vmem:[#allocation2 + $0x7] ss:$0 sm:$0xff] }
  0x42   : > { %v270_v29 = vadd.f32 %v970_v18, %v267_v23  ;;  %v500_v30 = vand.u32 2147483647, %v269_v24  ;;  %v502_v31 = vcvt.f32.s32 %v269_v24  ;;  %v505_v36 = vand.u32 2147483648, %v269_v24 }
  0x43   : > { %v487_v33 = vcvt.s32.f32 %v486_v27  ;;  %v492_v34 = vand.u32 2147483647, %v242_v25  ;;  %v494_v35 = vcvt.f32.s32 %v242_v25  ;;  %vm983_vm2 = vcmp.lt.f32.partialorder %v484_v26, 8388608.0 }
  0x44   : > { %v497_v39 = vand.u32 2147483648, %v242_v25  ;;  %v503_v40 = vcvt.s32.f32 %v502_v31  ;;  %v508_v41 = vand.u32 2147483647, %v270_v29  ;;  %vm987_vm3 = vcmp.lt.f32.partialorder %v500_v30, 8388608.0 }
  0x45   : > { %v488_v43 = vand.u32 2147483647, %v487_v33  ;;  %v495_v44 = vcvt.s32.f32 %v494_v35  ;;  %v510_v46 = vcvt.f32.s32 %v270_v29  ;;  %vm991_vm4 = vcmp.lt.f32.partialorder %v492_v34, 8388608.0 }
  0x46   : > { %v504_v48 = vand.u32 2147483647, %v503_v40  ;;  %v513_v49 = vand.u32 2147483648, %v270_v29  ;;  %vm997_vm5 = vcmp.lt.f32.partialorder %v508_v41, 8388608.0  ;;  %v299_v62 = vadd.f32 %v981_v37, %v296_v54 }
  0x47   : > { %v490_v51 = vor.u32 %v489_v28, %v488_v43  ;;  %v496_v52 = vand.u32 2147483647, %v495_v44  ;;  %v511_v53 = vcvt.s32.f32 %v510_v46  ;;  %v518_v1 = vcvt.f32.s32 %v298_v57 }
  0x48   : > { %v506_v55 = vor.u32 %v505_v36, %v504_v48  ;;  %v516_v7 = vand.u32 2147483647, %v298_v57  ;;  %v521_v13 = vand.u32 2147483648, %v298_v57  ;;  %v524_v17 = vand.u32 2147483647, %v299_v62 }
  0x49   : > { %v491_v59 = vsel %vm983_vm2, %v490_v51, %v241_v22  ;;  %v498_v60 = vor.u32 %v497_v39, %v496_v52  ;;  %v512_v61 = vand.u32 2147483647, %v511_v53  ;;  %v519_v11 = vcvt.s32.f32 %v518_v1  ;;  %v658_v52 = vld [vmem:[#allocation2 + $0x2] ss:$0 sm:$0xff] }
  0x4a   : > { %v245_v63 = vmax.f32 %v491_v59, 0.0  ;;  %v507_v0 = vsel %vm987_vm3, %v506_v55, %v269_v24  ;;  %v526_v20 = vcvt.f32.s32 %v299_v62  ;;  %vm1017_vm6 = vcmp.lt.f32.partialorder %v516_v7, 8388608.0 }
  0x4b   : > { %v499_v3 = vsel %vm991_vm4, %v498_v60, %v242_v25  ;;  %v514_v5 = vor.u32 %v513_v49, %v512_v61  ;;  %v273_v6 = vmax.f32 %v507_v0, 0.0  ;;  %v520_v25 = vand.u32 2147483647, %v519_v11 }
  0x4c   : > { %v246_v8 = vmax.f32 %v499_v3, 0.0  ;;  %v247_v9 = vmin.f32 %v245_v63, 255.0  ;;  %v527_v28 = vcvt.s32.f32 %v526_v20  ;;  %v529_v30 = vand.u32 2147483648, %v299_v62 }
  0x4d   : > { %v515_v14 = vsel %vm997_vm5, %v514_v5, %v270_v29  ;;  %v275_v16 = vmin.f32 %v273_v6, 255.0  ;;  %v522_v33 = vor.u32 %v521_v13, %v520_v25  ;;  %vm1022_vm7 = vcmp.lt.f32.partialorder %v524_v17, 8388608.0 }
  0x4e   : > { %v248_v22 = vmin.f32 %v246_v8, 255.0  ;;  %v249_v23 = vsub.f32 %v247_v9, %v965_v12  ;;  %v274_v24 = vmax.f32 %v515_v14, 0.0  ;;  %v528_v36 = vand.u32 2147483647, %v527_v28 }
  0x4f   : > { %v277_v26 = vsub.f32 %v275_v16, %v970_v18  ;;  %v327_v38 = vadd.f32 %v1013_v21, %v324_v58  ;;  %v328_v45 = vadd.f32 %v1013_v21, %v325_v2 }
  0x50   : > { %v250_v29 = vsub.f32 %v248_v22, %v965_v12  ;;  %v252_v31 = vmul.f32 %v652_v4, %v249_v23  ;;  %v276_v32 = vmin.f32 %v274_v24, 255.0  ;;  %v523_v12 = vsel %vm1017_vm6, %v522_v33, %v298_v57  ;;  %v661_v22 = vld [vmem:[#allocation2 + $0x3] ss:$0 sm:$0xff] }
  0x51   : > { %v280_v34 = vmul.f32 %v655_v10, %v277_v26  ;;  %v530_v43 = vor.u32 %v529_v30, %v528_v36  ;;  %v302_v44 = vmax.f32 %v523_v12, 0.0  ;;  %v534_v49 = vcvt.f32.s32 %v327_v38 }
  0x52   : > { %v253_v39 = vmul.f32 %v652_v4, %v250_v29  ;;  %v254_v40 = vsub.f32 %v252_v31, %v967_v15  ;;  %v278_v41 = vsub.f32 %v276_v32, %v970_v18  ;;  %v532_v53 = vand.u32 2147483647, %v327_v38 }
  0x53   : > { %v282_v42 = vsub.f32 %v280_v34, %v967_v15  ;;  %v531_v18 = vsel %vm1022_vm7, %v530_v43, %v299_v62  ;;  %v304_v51 = vmin.f32 %v302_v44, 255.0  ;;  %v535_v57 = vcvt.s32.f32 %v534_v49 }
  0x54   : > { %v255_v46 = vsub.f32 %v253_v39, %v972_v19  ;;  %v256_v47 = vmul.f32 %v254_v40, %v254_v40  ;;  %v281_v48 = vmul.f32 %v655_v10, %v278_v41  ;;  %v303_v56 = vmax.f32 %v531_v18, 0.0 }
  0x55   : > { %v284_v50 = vmul.f32 %v282_v42, %v282_v42  ;;  %v306_v58 = vsub.f32 %v304_v51, %v981_v37  ;;  %v537_v59 = vand.u32 2147483648, %v327_v38  ;;  %v540_v60 = vand.u32 2147483647, %v328_v45 }
  0x56   : > { %v257_v54 = vmul.f32 %v255_v46, %v255_v46  ;;  %v283_v55 = vsub.f32 %v281_v48, %v972_v19  ;;  %v542_v61 = vcvt.f32.s32 %v328_v45  ;;  %v305_v1 = vmin.f32 %v303_v56, 255.0 }
  0x57   : > { %v536_v2 = vand.u32 2147483647, %v535_v57  ;;  %v309_v62 = vmul.f32 %v658_v52, %v306_v58  ;;  %vm533_vm8 = vcmp.lt.f32.partialorder %v532_v53, 8388608.0  ;;  %v545_v4 = vand.u32 2147483648, %v328_v45 }
  0x58   : > { %v259_v63 = vadd.f32 %v257_v54, %v256_v47  ;;  %v285_v0 = vmul.f32 %v283_v55, %v283_v55  ;;  %v543_v3 = vcvt.s32.f32 %v542_v61  ;;  %v307_v6 = vsub.f32 %v305_v1, %v981_v37 }
  0x59   : > { %v538_v7 = vor.u32 %v537_v59, %v536_v2  ;;  %v311_v8 = vsub.f32 %v309_v62, %v967_v15  ;;  %vm541_vm9 = vcmp.lt.f32.partialorder %v540_v60, 8388608.0 }
  0x5a   : > { %v288_v5 = vadd.f32 %v285_v0, %v284_v50  ;;  %v544_v9 = vand.u32 2147483647, %v543_v3  ;;  %261 = vst [vmem:[%s1043_s29] sm:$0xff] %v259_v63  ;;  %v310_v10 = vmul.f32 %v658_v52, %v307_v6 }
  0x5b   : > { %v539_v11 = vsel %vm533_vm8, %v538_v7, %v327_v38  ;;  %v313_v37 = vmul.f32 %v311_v8, %v311_v8 }
  0x5c   : > { %v546_v13 = vor.u32 %v545_v4, %v544_v9  ;;  %v331_v14 = vmax.f32 %v539_v11, 0.0  ;;  %472 = vst [vmem:[%s1043_s29 + $0x8] sm:$0xff] %v288_v5  ;;  %v312_v16 = vsub.f32 %v310_v10, %v972_v19 }
  0x5e   : > { %v547_v17 = vsel %vm541_vm9, %v546_v13, %v328_v45  ;;  %v333_v20 = vmin.f32 %v331_v14, 255.0  ;;  %v314_v23 = vmul.f32 %v312_v16, %v312_v16 }
  0x5f   : > { %v332_v24 = vmax.f32 %v547_v17, 0.0 }
  0x60   : > { %v335_v25 = vsub.f32 %v333_v20, %v1013_v21  ;;  %v317_v26 = vadd.f32 %v314_v23, %v313_v37 }
  0x61   : > { %v334_v27 = vmin.f32 %v332_v24, 255.0 }
  0x62   : > { %v338_v28 = vmul.f32 %v661_v22, %v335_v25  ;;  %474 = vst [vmem:[%s1043_s29 + $0x10] sm:$0xff] %v317_v26 }
  0x63   : > { %v336_v30 = vsub.f32 %v334_v27, %v1013_v21 }
  0x64   : > { %v340_v29 = vsub.f32 %v338_v28, %v967_v15 }
  0x65   : > { %v339_v31 = vmul.f32 %v661_v22, %v336_v30 }
  0x66   : > { %v342_v33 = vmul.f32 %v340_v29, %v340_v29 }
  0x67   : > { %v341_v32 = vsub.f32 %v339_v31, %v972_v19 }
  0x69   : > { %v343_v34 = vmul.f32 %v341_v32, %v341_v32 }
  0x6b   : > { %v346_v35 = vadd.f32 %v343_v34, %v342_v33 }
  0x6d   : > { %476 = vst [vmem:[%s1043_s29 + $0x18] sm:$0xff] %v346_v35 }
  0x6e   : > { %749 = shalt.err (!%p746_p12)
}
  0x6f   : > { %s835_s23 = smov 128   ;;  %s836_s19 = smov 8  }
  0x70   : > { %554 = dma.vmem_to_hbm [thread:$0]  (%p907_p6), %s363_s24, 512, %s365_s25, %s350_s14, %s835_s23, %s835_s23, %s836_s19  }
  0x71 PF: > { %s379_s20 = sand.u32 1, %s801_s9   ;;  %p1119_p13 = scmp.ge.s32.totalorder %s829_s16, 2 }
  0x72   : > { %s380_s29 = scalar_lea.sflag [#allocation4], %s379_s20 }
  0x73   : > { %p565_p2 = pnand %p1119_p13, %p913_p10 }
  0x75   : > { %p566_p3 = pneg %p565_p2 }
  0x77   : > { %795 = dma.done.wait (%p566_p3), %s380_s29, 512  }
  0x78   : > { %797 = vsyncadd (%p566_p3), %s380_s29, 4294966784  ;;  %s19_s16 = sadd.s32 1, %s829_s16   ;;  %s1120_s9 = smov %s805_s10 }
  0x79   : > { %p16_p5 = scmp.ge.s32.totalorder %s19_s16, 4   ;;  %s1121_s10 = smov %s809_s11 }
  0x7a   : > { %s1122_s11 = smov %s942_s6  ;;  %s1123_s12 = smov %s817_s13 }
  0x7b   : > { %s1089_s13 = smov 0   ;;  %s1124_s14 = smov %s825_s15 }
  0x7c   : > { %s1125_s15 = smov %s1127_s3  ;;  %18 = sbr.rel (!%p16_p5) target bundleno = 8 (0x8), region = 85 }
  0x81   :  { %386 = vsyncpa [#allocation3], 1 }
  0x82   :  { %388 = vsyncpa [#allocation3 + $0x1], 1 }
  0x83   :  { %389 = vsyncpa [#allocation6], 1 }
  0x84   :  { %391 = vsyncpa [#allocation6 + $0x1], 1 }
  0x85   :  { %392 = vsyncpa [#allocation4], 1 }
  0x86   :  { %394 = vsyncpa [#allocation4 + $0x1], 1 }

</bundles_post_ra>
